<compile_context>
chip_gen: v7x
topology: tpu7x:2x2x1
jax: 0.10.0
libtpu: 0.0.40
codegen_flags: <defaults>
</compile_context>

<pallas_src>
import functools

import jax
import jax.numpy as jnp
from jax import lax
from jax.experimental import pallas as pl
from jax.experimental.pallas import tpu as pltpu

_EPS = 1e-12  # F.normalize default eps


def _round_up(a, b):
    return (a + b - 1) // b * b


def _center_loss_kernel(proto_ref, x_ref, out_ref, inv_p_ref, acc_ref, *,
                        m1, m2, n_shot, n_valid, tile_n, tiles_per_core):
    n_way, ndim = proto_ref.shape
    c = pl.program_id(0)            # core / partial-sum index (parallel)
    i = pl.program_id(1)            # sample-tile index within this core
    last = pl.num_programs(1) - 1

    # ---- per-core one-time init: prototype inverse norms + accumulator ------
    @pl.when(i == 0)
    def _init():
        protof0 = proto_ref[...].astype(jnp.float32)
        # v / max(||v||, eps) == v * rsqrt(max(||v||^2, eps^2))
        inv_p_ref[...] = lax.rsqrt(
            jnp.maximum(jnp.sum(protof0 * protof0, axis=-1, keepdims=True),
                        _EPS * _EPS))
        acc_ref[...] = jnp.zeros_like(acc_ref)

    # ---- streamed sample tile (native dtype in HBM, upcast here) ------------
    xf = x_ref[...].astype(jnp.float32)                       # (ndim, tile_n)
    inv_x = lax.rsqrt(
        jnp.maximum(jnp.sum(xf * xf, axis=0, keepdims=True), _EPS * _EPS))
    # inv_x: (1, tile_n), lane-dense

    protof = proto_ref[...].astype(jnp.float32)               # (n_way, ndim)
    # Natural (M,K)x(K,N) MXU feed; normalization folded in AFTER the matmul.
    s_raw = lax.dot_general(protof, xf, (((1,), (0,)), ((), ())),
                            precision=lax.Precision.HIGHEST,
                            preferred_element_type=jnp.float32)  # (n_way, tile_n)
    # Padded columns: xf col == 0 -> s_raw == 0 exactly -> D == 2 (masked out).
    D = 2.0 - 2.0 * (s_raw * inv_p_ref[...]) * inv_x

    cls = lax.broadcasted_iota(jnp.int32, (n_way, tile_n), 0)  # class/proto idx
    col = lax.broadcasted_iota(jnp.int32, (n_way, tile_n), 1)  # local sample idx
    g = col + (c * tiles_per_core + i) * tile_n                # global sample idx

    # loss1: sample g structurally belongs to class g // n_shot (range test, no
    # integer divide).  Padded columns (g >= n_valid) never match.
    mask1 = (g >= cls * n_shot) & (g < (cls + 1) * n_shot)
    # loss3: sample vs prototypes of classes it does NOT belong to (structural;
    # class-major balanced episode assumption, see module docstring NOTE).
    mask3 = (g < n_valid) & jnp.logical_not(mask1)

    w1 = 1.0 / (n_way * n_shot * 1.0)
    w3 = 1.0 / (n_way * (n_way - 1) * n_shot * 1.0)
    contrib = (jnp.where(mask1, jnp.maximum(D - m1, 0.0), 0.0) * w1
               + jnp.where(mask3, jnp.maximum(0.4 - D, 0.0), 0.0) * w3)
    acc_ref[...] += contrib                      # pure VPU adds per step

    # ---- finalize: one cross-lane reduce + SMEM store on the last step ------
    @pl.when(i == last)
    def _finalize():
        out_ref[0, 0] = jnp.sum(acc_ref[...])

    # loss2 (prototype pairwise term): once, on the core handling c == 0.
    @pl.when((i == last) & (c == 0))
    def _loss2():
        protof2 = proto_ref[...].astype(jnp.float32)
        phat = protof2 * inv_p_ref[...]                        # tiny (n_way, ndim)
        G = lax.dot_general(phat, phat, (((1,), (1,)), ((), ())),
                            precision=lax.Precision.HIGHEST,
                            preferred_element_type=jnp.float32)  # (n_way, n_way)
        P = 2.0 - 2.0 * G
        pr = lax.broadcasted_iota(jnp.int32, (n_way, n_way), 0)
        pc = lax.broadcasted_iota(jnp.int32, (n_way, n_way), 1)
        # torch: triu(P) + triu(ones).t() -- lower-incl-diag ones kill those
        # entries after relu(m2 - .)
        cpd = jnp.where(pc >= pr, P, 0.0) + jnp.where(pc <= pr, 1.0, 0.0)
        out_ref[0, 0] += jnp.sum(jnp.maximum(m2 - cpd, 0.0)) / 10.0


def center_loss(proto, x_shot, y_shot=None, m1=0.25, m2=0.9, tile_n=None):
    """JAX/Pallas equivalent of CenterLoss.forward (class-major episodes)."""
    n_way, n_shot, ndim = x_shot.shape
    N = n_way * n_shot
    del y_shot  # labels are implied by the class-major layout (see NOTE above)

    itemsize = jnp.dtype(x_shot.dtype).itemsize
    if tile_n is None:
        if N <= 1024:
            tile_n = _round_up(N, 128)
        else:
            # Keep the double-buffered streamed tile (2 * tile_n * ndim * B)
            # comfortably inside every generation's scoped VMEM (v7x: 32 MiB
            # default scoped / 64 MiB physical).
            per_col = max(ndim * itemsize, 1)
            tile_n = (4 * 1024 * 1024 // per_col) // 128 * 128
            tile_n = max(128, min(1024, tile_n))
    tile_n = max(128, _round_up(int(tile_n), 128))

    n_tiles = -(-N // tile_n)
    num_cores = 2 if n_tiles >= 2 else 1          # use both TCs on v7x
    tiles_per_core = -(-n_tiles // num_cores)
    n_pad = num_cores * tiles_per_core * tile_n

    # One cheap XLA transpose in HBM so the kernel's MXU feed is natural
    # (no per-tile transpose of the big streamed operand inside the kernel).
    x_t = jnp.transpose(x_shot.reshape(N, ndim))  # (ndim, N), native dtype
    if n_pad != N:
        x_t = jnp.pad(x_t, ((0, 0), (0, n_pad - N)))

    kernel = functools.partial(
        _center_loss_kernel, m1=float(m1), m2=float(m2),
        n_shot=n_shot, n_valid=N, tile_n=tile_n, tiles_per_core=tiles_per_core)

    partial_sums = pl.pallas_call(
        kernel,
        out_shape=jax.ShapeDtypeStruct((num_cores, 1), jnp.float32),
        grid=(num_cores, tiles_per_core),
        in_specs=[
            pl.BlockSpec((n_way, ndim), lambda c, i: (0, 0)),          # prototypes (resident)
            pl.BlockSpec((ndim, tile_n),
                         lambda c, i: (0, c * tiles_per_core + i)),    # sample tile (transposed)
        ],
        out_specs=pl.BlockSpec((1, 1), lambda c, i: (c, 0),
                               memory_space=pltpu.MemorySpace.SMEM),
        scratch_shapes=[
            pltpu.VMEM((n_way, 1), jnp.float32),        # prototype inverse norms
            pltpu.VMEM((n_way, tile_n), jnp.float32),   # per-core contrib accumulator
        ],
        compiler_params=pltpu.CompilerParams(
            dimension_semantics=("parallel", "arbitrary")),
    )(proto, x_t)
    return jnp.sum(partial_sums)


def _center_loss_ref(proto, x_shot, y_shot, m1=0.25, m2=0.9):
    """Pure-JAX reference mirroring the PyTorch code (balanced labels)."""
    n_way, n_shot, ndim = x_shot.shape

    def normalize(v):
        return v / jnp.maximum(jnp.linalg.norm(v, axis=-1, keepdims=True), _EPS)

    xh = normalize(x_shot)                              # (n_way, n_shot, ndim)
    ph = normalize(proto)                               # (n_way, ndim)
    loss1 = jnp.sum(
        jax.nn.relu(jnp.sum((xh - ph[:, None, :]) ** 2, -1) - m1)
    ) / (n_way * n_shot * 1.0)

    P = jnp.sum((ph[:, None, :] - ph[None, :, :]) ** 2, -1)
    ones_t = jnp.tril(jnp.ones((n_way, n_way), jnp.float32))
    cpd = jnp.triu(P) + ones_t
    loss2 = jnp.sum(jax.nn.relu(m2 - cpd)) / 10.0

    x_flat = x_shot.reshape(n_way * n_shot, ndim)
    xh_flat = normalize(x_flat)
    D = jnp.sum((xh_flat[:, None, :] - ph[None, :, :]) ** 2, -1)  # (N, n_way)
    mask = y_shot[:, None] != jnp.arange(n_way)[None, :]
    loss3 = jnp.sum(jnp.where(mask, jax.nn.relu(0.4 - D), 0.0)) / (
        n_way * (n_way - 1) * n_shot * 1.0
    )
    return loss1 + loss2 + loss3


if __name__ == "__main__":
    key = jax.random.PRNGKey(0)

    # --- test 1: small few-shot episode, single tile, single core ---
    n_way, n_shot, ndim = 4, 4, 128
    k_proto, k_shot, key = jax.random.split(key, 3)
    proto = jax.random.normal(k_proto, (n_way, ndim), dtype=jnp.float32)
    x_shot = jax.random.normal(k_shot, (n_way, n_shot, ndim), dtype=jnp.float32)
    y_shot = jnp.repeat(jnp.arange(n_way, dtype=jnp.int32), n_shot)

    out = jax.block_until_ready(center_loss(proto, x_shot, y_shot))
    ref = jax.block_until_ready(_center_loss_ref(proto, x_shot, y_shot))
    assert out.shape == (), f"expected scalar, got {out.shape}"
    assert jnp.allclose(out, ref, rtol=1e-5, atol=1e-5), (out, ref)

    # --- test 2: multi-tile path with padding + two partial-sum blocks ---
    n_way2, n_shot2, ndim2 = 6, 24, 64       # N = 144 -> two 128-sample tiles
    k_proto2, k_shot2, key = jax.random.split(key, 3)
    proto2 = jax.random.normal(k_proto2, (n_way2, ndim2), dtype=jnp.float32)
    x_shot2 = jax.random.normal(k_shot2, (n_way2, n_shot2, ndim2),
                                dtype=jnp.float32)
    y_shot2 = jnp.repeat(jnp.arange(n_way2, dtype=jnp.int32), n_shot2)

    out2 = jax.block_until_ready(
        center_loss(proto2, x_shot2, y_shot2, tile_n=128))
    ref2 = jax.block_until_ready(_center_loss_ref(proto2, x_shot2, y_shot2))
    assert out2.shape == (), f"expected scalar, got {out2.shape}"
    assert jnp.allclose(out2, ref2, rtol=1e-5, atol=1e-5), (out2, ref2)

    # --- test 3: bf16 activations streamed natively, upcast in-kernel ---
    n_way3, n_shot3, ndim3 = 5, 30, 96
    k_proto3, k_shot3, key = jax.random.split(key, 3)
    proto3 = jax.random.normal(k_proto3, (n_way3, ndim3),
                               dtype=jnp.float32).astype(jnp.bfloat16)
    x_shot3 = jax.random.normal(k_shot3, (n_way3, n_shot3, ndim3),
                                dtype=jnp.float32).astype(jnp.bfloat16)
    y_shot3 = jnp.repeat(jnp.arange(n_way3, dtype=jnp.int32), n_shot3)

    out3 = jax.block_until_ready(center_loss(proto3, x_shot3, y_shot3))
    ref3 = jax.block_until_ready(
        _center_loss_ref(proto3.astype(jnp.float32),
                         x_shot3.astype(jnp.float32), y_shot3))
    assert out3.shape == (), f"expected scalar, got {out3.shape}"
    assert jnp.allclose(out3, ref3, rtol=1e-5, atol=1e-5), (out3, ref3)

    print("KERNEL_OK")
</pallas_src>

<mosaic_0001>
module attributes {stable_mosaic.version = 11 : i64} {
  func.func @_center_loss_kernel(%arg0: i32, %arg1: i32, %arg2: memref<4x128xf32, #tpu.memory_space<vmem>>, %arg3: memref<128x128xf32, #tpu.memory_space<vmem>>, %arg4: memref<1x1xf32, #tpu.memory_space<smem>>, %arg5: memref<4x1xf32, #tpu.memory_space<vmem>>, %arg6: memref<4x128xf32, #tpu.memory_space<vmem>>) attributes {dimension_semantics = [#tpu.dimension_semantics<parallel>, #tpu.dimension_semantics<arbitrary>], iteration_bounds = array<i64: 1, 1>, scalar_prefetch = 0 : i64, scratch_operands = 2 : i64, tpu.core_type = #tpu.core_type<tc>, window_params = [{pipeline_mode = #tpu.pipeline_mode<synchronous>, transform_indices = @transform_0, window_bounds = array<i64: 4, 128>}, {transform_indices = @transform_1, window_bounds = array<i64: 128, 128>}, {transform_indices = @transform_2, window_bounds = array<i64: 1, 1>}]} {
    %c0_i32 = arith.constant 0 : i32
    %0 = arith.cmpi eq, %arg1, %c0_i32 : i32
    %1 = arith.extui %0 : i1 to i32
    %c0_i32_0 = arith.constant 0 : i32
    %2 = arith.cmpi ne, %1, %c0_i32_0 : i32
    scf.if %2 {
      %c0_30 = arith.constant 0 : index
      %c0_31 = arith.constant 0 : index
      %69 = vector.load %arg2[%c0_30, %c0_31] : memref<4x128xf32, #tpu.memory_space<vmem>>, vector<4x128xf32>
      %70 = arith.mulf %69, %69 : vector<4x128xf32>
      %cst_32 = arith.constant dense<0.000000e+00> : vector<4xf32>
      %71 = vector.multi_reduction <add>, %70, %cst_32 [1] : vector<4x128xf32> to vector<4xf32>
      %72 = vector.shape_cast %71 : vector<4xf32> to vector<4x1xf32>
      %cst_33 = arith.constant 1.000000e-24 : f32
      %73 = vector.broadcast %cst_33 : f32 to vector<4x1xf32>
      %74 = arith.maximumf %72, %73 : vector<4x1xf32>
      %75 = math.rsqrt %74 : vector<4x1xf32>
      %c0_34 = arith.constant 0 : index
      %c0_35 = arith.constant 0 : index
      %76 = vector.load %arg5[%c0_34, %c0_35] : memref<4x1xf32, #tpu.memory_space<vmem>>, vector<4x1xf32>
      tpu.vector_store %arg5[%c0_34, %c0_35], %75 {strides = array<i32>} : memref<4x1xf32, #tpu.memory_space<vmem>>, vector<4x1xf32>,
      %cst_36 = arith.constant 0.000000e+00 : f32
      %77 = vector.broadcast %cst_36 : f32 to vector<4x128xf32>
      %c0_37 = arith.constant 0 : index
      %c0_38 = arith.constant 0 : index
      %78 = vector.load %arg6[%c0_37, %c0_38] : memref<4x128xf32, #tpu.memory_space<vmem>>, vector<4x128xf32>
      tpu.vector_store %arg6[%c0_37, %c0_38], %77 {strides = array<i32>} : memref<4x128xf32, #tpu.memory_space<vmem>>, vector<4x128xf32>,
    } else {
    }
    %c0 = arith.constant 0 : index
    %c0_1 = arith.constant 0 : index
    %3 = vector.load %arg3[%c0, %c0_1] : memref<128x128xf32, #tpu.memory_space<vmem>>, vector<128x128xf32>
    %4 = arith.mulf %3, %3 : vector<128x128xf32>
    %cst = arith.constant dense<0.000000e+00> : vector<128xf32>
    %5 = vector.multi_reduction <add>, %4, %cst [0] : vector<128x128xf32> to vector<128xf32>
    %6 = vector.shape_cast %5 : vector<128xf32> to vector<1x128xf32>
    %cst_2 = arith.constant 1.000000e-24 : f32
    %7 = vector.broadcast %cst_2 : f32 to vector<1x128xf32>
    %8 = arith.maximumf %6, %7 : vector<1x128xf32>
    %9 = math.rsqrt %8 : vector<1x128xf32>
    %c0_3 = arith.constant 0 : index
    %c0_4 = arith.constant 0 : index
    %10 = vector.load %arg2[%c0_3, %c0_4] : memref<4x128xf32, #tpu.memory_space<vmem>>, vector<4x128xf32>
    %cst_5 = arith.constant dense<0.000000e+00> : vector<4x128xf32>
    %11 = tpu.matmul %10, %3, %cst_5 {dimension_numbers = #tpu.dot_dimension_numbers<[1], [0], [0], [1], [0, 0, 1, 1], [], []>, precision = #tpu.contract_precision<fp32>} : vector<4x128xf32>, vector<128x128xf32>, vector<4x128xf32> -> vector<4x128xf32>
    %c0_6 = arith.constant 0 : index
    %c0_7 = arith.constant 0 : index
    %12 = vector.load %arg5[%c0_6, %c0_7] : memref<4x1xf32, #tpu.memory_space<vmem>>, vector<4x1xf32>
    %13 = vector.broadcast %12 : vector<4x1xf32> to vector<4x128xf32>
    %14 = arith.mulf %11, %13 : vector<4x128xf32>
    %cst_8 = arith.constant 2.000000e+00 : f32
    %15 = vector.broadcast %cst_8 : f32 to vector<4x128xf32>
    %16 = arith.mulf %15, %14 : vector<4x128xf32>
    %17 = vector.broadcast %9 : vector<1x128xf32> to vector<4x128xf32>
    %18 = arith.mulf %16, %17 : vector<4x128xf32>
    %cst_9 = arith.constant 2.000000e+00 : f32
    %19 = vector.broadcast %cst_9 : f32 to vector<4x128xf32>
    %20 = arith.subf %19, %18 : vector<4x128xf32>
    %21 = tpu.iota {dimensions = array<i32: 0>} : vector<4x128xi32>
    %22 = tpu.iota {dimensions = array<i32: 1>} : vector<4x128xi32>
    %c1_i32 = arith.constant 1 : i32
    %23 = arith.muli %arg0, %c1_i32 : i32
    %24 = arith.addi %23, %arg1 : i32
    %c128_i32 = arith.constant 128 : i32
    %25 = arith.muli %24, %c128_i32 : i32
    %26 = vector.broadcast %25 : i32 to vector<4x128xi32>
    %27 = arith.addi %22, %26 : vector<4x128xi32>
    %c4_i32 = arith.constant 4 : i32
    %28 = vector.broadcast %c4_i32 : i32 to vector<4x128xi32>
    %29 = arith.muli %21, %28 : vector<4x128xi32>
    %30 = arith.cmpi sge, %27, %29 : vector<4x128xi32>
    %c1_i32_10 = arith.constant 1 : i32
    %31 = vector.broadcast %c1_i32_10 : i32 to vector<4x128xi32>
    %32 = arith.addi %21, %31 : vector<4x128xi32>
    %c4_i32_11 = arith.constant 4 : i32
    %33 = vector.broadcast %c4_i32_11 : i32 to vector<4x128xi32>
    %34 = arith.muli %32, %33 : vector<4x128xi32>
    %35 = arith.cmpi slt, %27, %34 : vector<4x128xi32>
    %36 = arith.andi %30, %35 : vector<4x128xi1>
    %c16_i32 = arith.constant 16 : i32
    %37 = vector.broadcast %c16_i32 : i32 to vector<4x128xi32>
    %38 = arith.cmpi slt, %27, %37 : vector<4x128xi32>
    %cst_12 = arith.constant dense<true> : vector<4x128xi1>
    %39 = arith.xori %36, %cst_12 : vector<4x128xi1>
    %40 = arith.andi %38, %39 : vector<4x128xi1>
    %cst_13 = arith.constant 2.500000e-01 : f32
    %41 = vector.broadcast %cst_13 : f32 to vector<4x128xf32>
    %42 = arith.subf %20, %41 : vector<4x128xf32>
    %cst_14 = arith.constant 0.000000e+00 : f32
    %43 = vector.broadcast %cst_14 : f32 to vector<4x128xf32>
    %44 = arith.maximumf %42, %43 : vector<4x128xf32>
    %cst_15 = arith.constant 0.000000e+00 : f32
    %45 = vector.broadcast %cst_15 : f32 to vector<4x128xf32>
    %46 = arith.select %36, %44, %45 : vector<4x128xi1>, vector<4x128xf32>
    %cst_16 = arith.constant 6.250000e-02 : f32
    %47 = vector.broadcast %cst_16 : f32 to vector<4x128xf32>
    %48 = arith.mulf %46, %47 : vector<4x128xf32>
    %cst_17 = arith.constant 4.000000e-01 : f32
    %49 = vector.broadcast %cst_17 : f32 to vector<4x128xf32>
    %50 = arith.subf %49, %20 : vector<4x128xf32>
    %cst_18 = arith.constant 0.000000e+00 : f32
    %51 = vector.broadcast %cst_18 : f32 to vector<4x128xf32>
    %52 = arith.maximumf %50, %51 : vector<4x128xf32>
    %cst_19 = arith.constant 0.000000e+00 : f32
    %53 = vector.broadcast %cst_19 : f32 to vector<4x128xf32>
    %54 = arith.select %40, %52, %53 : vector<4x128xi1>, vector<4x128xf32>
    %cst_20 = arith.constant 0.020833334 : f32
    %55 = vector.broadcast %cst_20 : f32 to vector<4x128xf32>
    %56 = arith.mulf %54, %55 : vector<4x128xf32>
    %57 = arith.addf %48, %56 : vector<4x128xf32>
    %c0_21 = arith.constant 0 : index
    %c0_22 = arith.constant 0 : index
    %58 = vector.load %arg6[%c0_21, %c0_22] : memref<4x128xf32, #tpu.memory_space<vmem>>, vector<4x128xf32>
    %59 = arith.addf %58, %57 : vector<4x128xf32>
    %c0_23 = arith.constant 0 : index
    %c0_24 = arith.constant 0 : index
    %60 = vector.load %arg6[%c0_23, %c0_24] : memref<4x128xf32, #tpu.memory_space<vmem>>, vector<4x128xf32>
    tpu.vector_store %arg6[%c0_23, %c0_24], %59 {strides = array<i32>} : memref<4x128xf32, #tpu.memory_space<vmem>>, vector<4x128xf32>,
    %c0_i32_25 = arith.constant 0 : i32
    %61 = arith.cmpi eq, %arg1, %c0_i32_25 : i32
    %62 = arith.extui %61 : i1 to i32
    %c0_i32_26 = arith.constant 0 : i32
    %63 = arith.cmpi ne, %62, %c0_i32_26 : i32
    scf.if %63 {
      %c0_30 = arith.constant 0 : index
      %c0_31 = arith.constant 0 : index
      %69 = vector.load %arg6[%c0_30, %c0_31] : memref<4x128xf32, #tpu.memory_space<vmem>>, vector<4x128xf32>
      %70 = vector.shape_cast %69 : vector<4x128xf32> to vector<1x4x128xf32>
      %cst_32 = arith.constant dense<0.000000e+00> : vector<1xf32>
      %71 = vector.multi_reduction <add>, %70, %cst_32 [1, 2] : vector<1x4x128xf32> to vector<1xf32>
      %72 = vector.shape_cast %71 : vector<1xf32> to vector<1x1x1xf32>
      %73 = vector.extract %72[0, 0, 0] : f32 from vector<1x1x1xf32>
      %c0_33 = arith.constant 0 : index
      %c0_34 = arith.constant 0 : index
      %74 = memref.load %arg4[%c0_33, %c0_34] : memref<1x1xf32, #tpu.memory_space<smem>>
      memref.store %73, %arg4[%c0_33, %c0_34] : memref<1x1xf32, #tpu.memory_space<smem>>
    } else {
    }
    %c0_i32_27 = arith.constant 0 : i32
    %64 = arith.cmpi eq, %arg1, %c0_i32_27 : i32
    %c0_i32_28 = arith.constant 0 : i32
    %65 = arith.cmpi eq, %arg0, %c0_i32_28 : i32
    %66 = arith.andi %64, %65 : i1
    %67 = arith.extui %66 : i1 to i32
    %c0_i32_29 = arith.constant 0 : i32
    %68 = arith.cmpi ne, %67, %c0_i32_29 : i32
    scf.if %68 {
      %c0_30 = arith.constant 0 : index
      %c0_31 = arith.constant 0 : index
      %69 = vector.load %arg2[%c0_30, %c0_31] : memref<4x128xf32, #tpu.memory_space<vmem>>, vector<4x128xf32>
      %c0_32 = arith.constant 0 : index
      %c0_33 = arith.constant 0 : index
      %70 = vector.load %arg5[%c0_32, %c0_33] : memref<4x1xf32, #tpu.memory_space<vmem>>, vector<4x1xf32>
      %71 = vector.broadcast %70 : vector<4x1xf32> to vector<4x128xf32>
      %72 = arith.mulf %69, %71 : vector<4x128xf32>
      %cst_34 = arith.constant dense<0.000000e+00> : vector<4x4xf32>
      %73 = tpu.matmul %72, %72, %cst_34 {dimension_numbers = #tpu.dot_dimension_numbers<[1], [1], [0], [0], [0, 0, 1, 0], [], []>, precision = #tpu.contract_precision<fp32>} : vector<4x128xf32>, vector<4x128xf32>, vector<4x4xf32> -> vector<4x4xf32>
      %cst_35 = arith.constant 2.000000e+00 : f32
      %74 = vector.broadcast %cst_35 : f32 to vector<4x4xf32>
      %75 = arith.mulf %74, %73 : vector<4x4xf32>
      %cst_36 = arith.constant 2.000000e+00 : f32
      %76 = vector.broadcast %cst_36 : f32 to vector<4x4xf32>
      %77 = arith.subf %76, %75 : vector<4x4xf32>
      %78 = tpu.iota {dimensions = array<i32: 0>} : vector<4x4xi32>
      %79 = tpu.iota {dimensions = array<i32: 1>} : vector<4x4xi32>
      %80 = arith.cmpi sge, %79, %78 : vector<4x4xi32>
      %cst_37 = arith.constant 0.000000e+00 : f32
      %81 = vector.broadcast %cst_37 : f32 to vector<4x4xf32>
      %82 = arith.select %80, %77, %81 : vector<4x4xi1>, vector<4x4xf32>
      %83 = arith.cmpi sle, %79, %78 : vector<4x4xi32>
      %cst_38 = arith.constant 1.000000e+00 : f32
      %cst_39 = arith.constant 0.000000e+00 : f32
      %84 = vector.broadcast %cst_38 : f32 to vector<4x4xf32>
      %85 = vector.broadcast %cst_39 : f32 to vector<4x4xf32>
      %86 = arith.select %83, %84, %85 : vector<4x4xi1>, vector<4x4xf32>
      %87 = arith.addf %82, %86 : vector<4x4xf32>
      %c0_40 = arith.constant 0 : index
      %c0_41 = arith.constant 0 : index
      %88 = memref.load %arg4[%c0_40, %c0_41] : memref<1x1xf32, #tpu.memory_space<smem>>
      %cst_42 = arith.constant 0.899999976 : f32
      %89 = vector.broadcast %cst_42 : f32 to vector<4x4xf32>
      %90 = arith.subf %89, %87 : vector<4x4xf32>
      %cst_43 = arith.constant 0.000000e+00 : f32
      %91 = vector.broadcast %cst_43 : f32 to vector<4x4xf32>
      %92 = arith.maximumf %90, %91 : vector<4x4xf32>
      %93 = vector.shape_cast %92 : vector<4x4xf32> to vector<1x4x4xf32>
      %cst_44 = arith.constant dense<0.000000e+00> : vector<1xf32>
      %94 = vector.multi_reduction <add>, %93, %cst_44 [1, 2] : vector<1x4x4xf32> to vector<1xf32>
      %95 = vector.shape_cast %94 : vector<1xf32> to vector<1x1x1xf32>
      %96 = vector.extract %95[0, 0, 0] : f32 from vector<1x1x1xf32>
      %cst_45 = arith.constant 1.000000e+01 : f32
      %97 = arith.divf %96, %cst_45 : f32
      %98 = arith.addf %88, %97 : f32
      %c0_46 = arith.constant 0 : index
      %c0_47 = arith.constant 0 : index
      %99 = memref.load %arg4[%c0_46, %c0_47] : memref<1x1xf32, #tpu.memory_space<smem>>
      memref.store %98, %arg4[%c0_46, %c0_47] : memref<1x1xf32, #tpu.memory_space<smem>>
    } else {
    }
    return
  }
  func.func @transform_0(%arg0: i32, %arg1: i32) -> (i32, i32) {
    %c0_i32 = arith.constant 0 : i32
    %c0_i32_0 = arith.constant 0 : i32
    %c0_i32_1 = arith.constant 0 : i32
    return %c0_i32, %c0_i32_0 : i32, i32
  }
  func.func @transform_1(%arg0: i32, %arg1: i32) -> (i32, i32) {
    %c1_i32 = arith.constant 1 : i32
    %0 = arith.muli %arg0, %c1_i32 : i32
    %1 = arith.addi %0, %arg1 : i32
    %c0_i32 = arith.constant 0 : i32
    %c0_i32_0 = arith.constant 0 : i32
    return %c0_i32, %1 : i32, i32
  }
  func.func @transform_2(%arg0: i32, %arg1: i32) -> (i32, i32) {
    %c0_i32 = arith.constant 0 : i32
    %c0_i32_0 = arith.constant 0 : i32
    return %arg0, %c0_i32 : i32, i32
  }
}

</mosaic_0001>

<bundles_post_ra>
// kernel: tpu_custom_call.1
= control target key start
LH: loop header
LB: loop body
LE: loop exit
PB: predicated region body
PF: predicated region fallthrough
CT: control target
= control target key end

     0   :  { %7 = vsyncpa [#allocation5], 0  ;;  %s2366_s0 = inlined_call_operand.hbm [shape: f32[4,128], index: 0, kind: input, shape index: {}]   ;;  %s2367_s1 = inlined_call_operand.hbm [shape: f32[128,128], index: 1, kind: input, shape index: {}]   ;;  %s2368_s2 = inlined_call_operand.hbm [shape: f32[1,1], index: 2, kind: output, shape index: {}]  }
   0x1   :  { %8 = vsyncpa [#allocation8], 0 }
   0x2   :  { %9 = vsyncpa [#allocation6], 0  ;;  %s1908_s9 = smov [#allocation4]   ;;  %s1909_s11 = smov [#allocation7]  }
   0x3   :  { %s16_s10 = sshll.u32 %s1908_s9, 4  ;;  %s28_s12 = sshll.u32 %s1909_s11, 4  ;;  %s17_s10 = int_to_ptr.vmem [resolvable:$true] %s16_s10  ;;  %s1933_s12 = int_to_ptr.vmem [resolvable:$true] %s28_s12 }
   0x4   :  { %s1848_s15 = scalar_lea.hbm %s2366_s0, 64 }
   0x5   :  { %p1849_p0 = scmp.ne.s32.totalorder %s2366_s0, %s1848_s15  ;;  %p1852_p1 = scmp.lt.u32.totalorder %s1848_s15, %s2366_s0 }
   0x7   :  { %p1854_p2 = pnand %p1852_p1, %p1849_p0 }
   0x9   :  { %1857 = shalt.err (!%p1854_p2)
}
   0xa   :  { %s1858_s20 = scalar_lea.vmem %s17_s10, 64  ;;  %p1863_p4 = scmp.lt.s32.totalorder %s17_s10, %s17_s10 }
   0xb   :  { %p1859_p3 = scmp.ne.s32.totalorder %s17_s10, %s1858_s20  ;;  %p1864_p5 = scmp.lt.s32.totalorder %s1858_s20, %s1858_s20 }
   0xd   :  { %p1865_p6 = por %p1864_p5, %p1863_p4 }
   0xf   :  { %p1866_p7 = pnand %p1865_p6, %p1859_p3 }
  0x11   :  { %1869 = shalt.err (!%p1866_p7)
}
  0x12   :  { %19 = dma.hbm_to_vmem [thread:$0]  %s2366_s0, 64, %s17_s10, [#allocation5]  }
  0x13   :  { %s1870_s25 = scalar_lea.hbm %s2367_s1, 2048 }
  0x14   :  { %p1871_p8 = scmp.ne.s32.totalorder %s2367_s1, %s1870_s25  ;;  %p1874_p9 = scmp.lt.u32.totalorder %s1870_s25, %s2367_s1 }
  0x16   :  { %p1876_p10 = pnand %p1874_p9, %p1871_p8 }
  0x18   :  { %1879 = shalt.err (!%p1876_p10)
}
  0x19   :  { %s1880_s30 = scalar_lea.vmem %s1933_s12, 2048  ;;  %p1885_p12 = scmp.lt.s32.totalorder %s1933_s12, %s1933_s12 }
  0x1a   :  { %p1881_p11 = scmp.ne.s32.totalorder %s1933_s12, %s1880_s30  ;;  %p1886_p13 = scmp.lt.s32.totalorder %s1880_s30, %s1880_s30 }
  0x1c   :  { %p1887_p0 = por %p1886_p13, %p1885_p12 }
  0x1e   :  { %p1888_p1 = pnand %p1887_p0, %p1881_p11 }
  0x20   :  { %1891 = shalt.err (!%p1888_p1)
}
  0x21   :  { %s1910_s0 = smov 128   ;;  %s1911_s3 = smov 8  }
  0x22   :  { %34 = dma.hbm_to_vmem [thread:$0]  %s2367_s1, 2048, %s1933_s12, [#allocation8], %s1910_s0, %s1910_s0, %s1911_s3  }
  0x23   :  { %1902 = dma.done.wait [#allocation5], 64  }
  0x24   :  { %1903 = vsyncadd [#allocation5], 4294967232 }
  0x25   :  { %1904 = dma.done.wait [#allocation8], 2048  }
  0x26   :  { %1905 = vsyncadd [#allocation8], 4294965248  ;;  %v1912_v0 = vmov 0.0|0.0   ;;  %v1913_v1 = vmov 0.0   ;;  %vm1914_vm0 = vmmov 0   ;;  %vm48_vm1 = vcmask 1043456  }
  0x27   :  { %1666 = vmatprep.subr.bf16.mxu1 %v1912_v0  ;;  %1738 = vmatprep.subr.bf16.mxu0 %v1912_v0  ;;  %56 = vst [vmem:[#allocation3] sm:$0xf] %v1913_v1  ;;  %v46_v2 = vld [vmem:[#allocation4] sm:$0xf]  ;;  %v1971_v3 = vld [vmem:[#allocation7] sm:$0xff]  ;;  %v1973_v4 = vld [vmem:[#allocation7 + $0x8] sm:$0xff] }
  0x28   :  { %1458 = vmatprep.mubr.msk.f32.mxu1 %vm1914_vm0, %v1913_v1  ;;  %1563 = vmatprep.mubr.msk.f32.mxu0 %vm1914_vm0, %v1913_v1  ;;  %v47_v5 = vmul.f32 %v46_v2, %v46_v2  ;;  %v73_v6 = vmul.f32 %v1971_v3, %v1971_v3  ;;  %v74_v7 = vmul.f32 %v1973_v4, %v1973_v4  ;;  %v114_v8 = vand.u32 4294901760, %v1971_v3  ;;  %v1980_v9 = vld [vmem:[#allocation7 + $0x10] sm:$0xff]  ;;  %v1982_v10 = vld [vmem:[#allocation7 + $0x18] sm:$0xff]  ;;  %v1992_v18 = vld [vmem:[#allocation7 + $0x20] sm:$0xff]  ;;  %s1892_s11 = scalar_lea.hbm %s2368_s2, 16 }
  0x29   :  { %v117_v11 = vand.u32 4294901760, %v1973_v4  ;;  %v75_v12 = vmul.f32 %v1980_v9, %v1980_v9  ;;  %v120_v13 = vand.u32 4294901760, %v1980_v9  ;;  %v76_v16 = vmul.f32 %v1982_v10, %v1982_v10  ;;  %v1994_v19 = vld [vmem:[#allocation7 + $0x28] sm:$0xff]  ;;  %v2012_v28 = vld [vmem:[#allocation7 + $0x30] sm:$0xff]  ;;  %v2014_v29 = vld [vmem:[#allocation7 + $0x38] sm:$0xff]  ;;  %p1893_p2 = scmp.ne.s32.totalorder %s2368_s2, %s1892_s11  ;;  %p1896_p3 = scmp.lt.u32.totalorder %s1892_s11, %s2368_s2 }
  0x2a   :  { %v49_v14 = vsel %vm48_vm1, %v47_v5, 0.0  ;;  %v89_v15 = vadd.f32 %v74_v7, %v73_v6  ;;  %v123_v17 = vand.u32 4294901760, %v1982_v10  ;;  %v77_v22 = vmul.f32 %v1992_v18, %v1992_v18  ;;  %v2032_v37 = vld [vmem:[#allocation7 + $0x40] sm:$0xff]  ;;  %v2034_v38 = vld [vmem:[#allocation7 + $0x48] sm:$0xff]  ;;  %v2048_v44 = vld [vmem:[#allocation7 + $0x50] sm:$0xff] }
  0x2b   :  { %50 = vadd.xlane.f32.xlu0 %v49_v14  ;;  %v1996_v20 = vpack.c.bf16 %v117_v11, %v114_v8  ;;  %v126_v24 = vand.u32 4294901760, %v1992_v18  ;;  %v129_v25 = vand.u32 4294901760, %v1994_v19  ;;  %v78_v27 = vmul.f32 %v1994_v19, %v1994_v19  ;;  %v2050_v45 = vld [vmem:[#allocation7 + $0x58] sm:$0xff]  ;;  %v2080_v59 = vld [vmem:[#allocation7 + $0x60] sm:$0xff]  ;;  %v2082_v60 = vld [vmem:[#allocation7 + $0x68] sm:$0xff]  ;;  %p1898_p4 = pnand %p1896_p3, %p1893_p2 }
  0x2c   :  { %v90_v21 = vadd.f32 %v89_v15, %v75_v12  ;;  %v2004_v23 = vpack.c.bf16 %v123_v17, %v120_v13  ;;  %v79_v31 = vmul.f32 %v2012_v28, %v2012_v28  ;;  %v132_v33 = vand.u32 4294901760, %v2012_v28  ;;  %v112_v46 = vld [vmem:[#allocation4] sm:$0xf] }
  0x2d   :  { %1668 = vmatpush3.bf16.msra.mxu1 %v1996_v20  ;;  %1740 = vmatpush3.bf16.msra.mxu0 %v1996_v20  ;;  %v2024_v32 = vpack.c.bf16 %v129_v25, %v126_v24  ;;  %v135_v34 = vand.u32 4294901760, %v2014_v29  ;;  %v80_v36 = vmul.f32 %v2014_v29, %v2014_v29  ;;  %v81_v40 = vmul.f32 %v2032_v37, %v2032_v37  ;;  %v2115_v12 = vld [vmem:[#allocation7 + $0x78] sm:$0xff] }
  0x2e   :  { %1669 = vmatprep.subr.bf16.mxu1 %v1912_v0  ;;  %1741 = vmatprep.subr.bf16.mxu0 %v1912_v0  ;;  %v91_v26 = vadd.f32 %v90_v21, %v76_v16  ;;  %v138_v42 = vand.u32 4294901760, %v2032_v37  ;;  %v141_v43 = vand.u32 4294901760, %v2034_v38  ;;  %v82_v48 = vmul.f32 %v2034_v38, %v2034_v38 }
  0x2f   :  { %v2044_v41 = vpack.c.bf16 %v135_v34, %v132_v33  ;;  %v83_v49 = vmul.f32 %v2048_v44, %v2048_v44  ;;  %v144_v51 = vand.u32 4294901760, %v2048_v44  ;;  %v147_v52 = vand.u32 4294901760, %v2050_v45 }
  0x30   :  { %v92_v30 = vadd.f32 %v91_v26, %v77_v22  ;;  %v2060_v53 = vand.u32 4294901760, %v112_v46  ;;  %v2063_v54 = vsub.f32 %v1971_v3, %v114_v8  ;;  %v2066_v55 = vsub.f32 %v1973_v4, %v117_v11  ;;  %v2100_v4 = vld [vmem:[#allocation7 + $0x70] sm:$0xff] }
  0x31   :  { %1671 = vmatpush3.bf16.msra.mxu1 %v2004_v23  ;;  %1743 = vmatpush3.bf16.msra.mxu0 %v2004_v23  ;;  %v2074_v56 = vpack.c.bf16 %v141_v43, %v138_v42  ;;  %v84_v58 = vmul.f32 %v2050_v45, %v2050_v45  ;;  %v2087_v61 = vsub.f32 %v1980_v9, %v120_v13  ;;  %v150_v6 = vand.u32 4294901760, %v2080_v59 }
  0x32   :  { %1672 = vmatprep.subr.bf16.mxu1 %v1912_v0  ;;  %1744 = vmatprep.subr.bf16.mxu0 %v1912_v0  ;;  %v93_v35 = vadd.f32 %v92_v30, %v78_v27  ;;  %v2090_v62 = vsub.f32 %v1982_v10, %v123_v17  ;;  %v2096_v2 = vpack.c.bf16 %v147_v52, %v144_v51  ;;  %v153_v7 = vand.u32 4294901760, %v2082_v60 }
  0x33   :  { %v85_v3 = vmul.f32 %v2080_v59, %v2080_v59  ;;  %v2103_v5 = vsub.f32 %v112_v46, %v2060_v53  ;;  %v207_v8 = vand.u32 4294901760, %v2063_v54  ;;  %v214_v9 = vand.u32 4294901760, %v2066_v55 }
  0x34   :  { %v94_v39 = vadd.f32 %v93_v35, %v79_v31  ;;  %v86_v11 = vmul.f32 %v2082_v60, %v2082_v60  ;;  %v2120_v13 = vsub.f32 %v1992_v18, %v126_v24  ;;  %v2125_v14 = vsub.f32 %v1994_v19, %v129_v25 }
  0x35   :  { %1674 = vmatpush3.bf16.msra.mxu1 %v2024_v32  ;;  %1746 = vmatpush3.bf16.msra.mxu0 %v2024_v32  ;;  %v87_v15 = vmul.f32 %v2100_v4, %v2100_v4  ;;  %v156_v16 = vand.u32 4294901760, %v2100_v4  ;;  %v196_v21 = vand.u32 4294901760, %v2103_v5  ;;  %v221_v22 = vand.u32 4294901760, %v2087_v61 }
  0x36   :  { %1675 = vmatprep.subr.bf16.mxu1 %v1912_v0  ;;  %1747 = vmatprep.subr.bf16.mxu0 %v1912_v0  ;;  %v95_v47 = vadd.f32 %v94_v39, %v80_v36  ;;  %v228_v26 = vand.u32 4294901760, %v2090_v62  ;;  %v2139_v18 = vpack.c.bf16 %v153_v7, %v150_v6  ;;  %v159_v19 = vand.u32 4294901760, %v2115_v12 }
  0x37   :  { %v208_v24 = vsub.f32 %v2063_v54, %v207_v8  ;;  %v215_v25 = vsub.f32 %v2066_v55, %v214_v9  ;;  %v88_v30 = vmul.f32 %v2115_v12, %v2115_v12  ;;  %v2151_v31 = vsub.f32 %v2012_v28, %v132_v33 }
  0x38   :  { %v96_v50 = vadd.f32 %v95_v47, %v81_v40  ;;  %v235_v35 = vand.u32 4294901760, %v2120_v13  ;;  %v242_v36 = vand.u32 4294901760, %v2125_v14  ;;  %v197_v40 = vsub.f32 %v2103_v5, %v196_v21 }
  0x39   :  { %1677 = vmatpush3.bf16.msra.mxu1 %v2044_v41  ;;  %1749 = vmatpush3.bf16.msra.mxu0 %v2044_v41  ;;  %v222_v46 = vsub.f32 %v2087_v61, %v221_v22  ;;  %v229_v47 = vsub.f32 %v2090_v62, %v228_v26  ;;  %v2169_v28 = vpack.c.bf16 %v159_v19, %v156_v16  ;;  %v209_v33 = vand.u32 4294901760, %v208_v24 }
  0x3a   :  { %1678 = vmatprep.subr.bf16.mxu1 %v1912_v0  ;;  %1750 = vmatprep.subr.bf16.mxu0 %v1912_v0  ;;  %v97_v57 = vadd.f32 %v96_v50, %v82_v48  ;;  %v2161_v48 = vsub.f32 %v2014_v29, %v135_v34  ;;  %v2178_v29 = vsub.f32 %v2032_v37, %v138_v42  ;;  %v249_v37 = vand.u32 4294901760, %v2151_v31 }
  0x3b   :  { %v2183_v34 = vsub.f32 %v2034_v38, %v141_v43  ;;  %v2196_v38 = vsub.f32 %v2048_v44, %v144_v51  ;;  %v2201_v43 = vsub.f32 %v2050_v45, %v147_v52  ;;  %v2212_v52 = vsub.f32 %v2080_v59, %v150_v6 }
  0x3c   :  { %v98_v63 = vadd.f32 %v97_v57, %v83_v49  ;;  %v216_v49 = vand.u32 4294901760, %v215_v25  ;;  %v1763_v57 = vpack.c.bf16 %v214_v9, %v207_v8  ;;  %v256_v42 = vand.u32 4294901760, %v2161_v48 }
  0x3d   :  { %1680 = vmatpush3.bf16.msra.mxu1 %v2074_v56  ;;  %1752 = vmatpush3.bf16.msra.mxu0 %v2074_v56  ;;  %v1915_v8 = vmov 0   ;;  %v1766_v9 = vpack.c.bf16 %v228_v26, %v221_v22  ;;  %v263_v24 = vand.u32 4294901760, %v2178_v29  ;;  %v270_v25 = vand.u32 4294901760, %v2183_v34 }
  0x3e   :  { %1681 = vmatprep.subr.bf16.mxu1 %v1912_v0  ;;  %1753 = vmatprep.subr.bf16.mxu0 %v1912_v0  ;;  %v99_v10 = vadd.f32 %v98_v63, %v84_v58  ;;  %v236_v58 = vsub.f32 %v2120_v13, %v235_v35  ;;  %v198_v63 = vand.u32 4294901760, %v197_v40  ;;  %v257_v45 = vsub.f32 %v2161_v48, %v256_v42 }
  0x3f   :  { %1843 = vset.pattern.permute.xlu1 %v1915_v8  ;;  %1842 = vset.pattern.permute.xlu0 %v1915_v8  ;;  %v264_v22 = vsub.f32 %v2178_v29, %v263_v24  ;;  %v271_v26 = vsub.f32 %v2183_v34, %v270_v25  ;;  %v284_v59 = vand.u32 4294901760, %v2201_v43  ;;  %v2232_v40 = vsub.f32 %v2100_v4, %v156_v16 }
  0x40   :  { %v100_v17 = vadd.f32 %v99_v10, %v85_v3  ;;  %v223_v3 = vand.u32 4294901760, %v222_v46  ;;  %v230_v10 = vand.u32 4294901760, %v229_v47  ;;  %v2237_v46 = vsub.f32 %v2115_v12, %v159_v19 }
  0x41   :  { %1683 = vmatpush3.bf16.msra.mxu1 %v2096_v2  ;;  %1755 = vmatpush3.bf16.msra.mxu0 %v2096_v2  ;;  %v265_v47 = vand.u32 4294901760, %v264_v22  ;;  %v1775_v16 = vpack.c.bf16 %v270_v25, %v263_v24  ;;  %vm54_vm2 = vcmask 3072   ;;  %vm1916_vm7 = vmmov 1  }
  0x42   :  { %1684 = vmatprep.subr.bf16.mxu1 %v1912_v0  ;;  %1756 = vmatprep.subr.bf16.mxu0 %v1912_v0  ;;  %v101_v27 = vadd.f32 %v100_v17, %v86_v11  ;;  %v243_v11 = vsub.f32 %v2125_v14, %v242_v36  ;;  %v237_v17 = vand.u32 4294901760, %v236_v58  ;;  %v1694_v44 = vpack.c.bf16 %v230_v10, %v223_v3 }
  0x43   :  { %v291_v58 = vand.u32 4294901760, %v2212_v52  ;;  %vm1279_vm12 = vcmask 27648  }
  0x44   :  { %v102_v39 = vadd.f32 %v101_v27, %v87_v15  ;;  %v1691_v15 = vpack.c.bf16 %v216_v49, %v209_v33  ;;  %v244_v51 = vand.u32 4294901760, %v243_v11  ;;  %v250_v27 = vsub.f32 %v2151_v31, %v249_v37 }
  0x45   :  { %1686 = vmatpush3.bf16.msra.mxu1 %v2139_v18  ;;  %1758 = vmatpush3.bf16.msra.mxu0 %v2139_v18  ;;  %v272_v33 = vand.u32 4294901760, %v271_v26  ;;  %v292_v3 = vsub.f32 %v2212_v52, %v291_v58  ;;  %v305_v11 = vand.u32 4294901760, %v2232_v40  ;;  %v1715_v26 = vpack.c.bf16 %v2066_v55, %v2063_v54 }
  0x46   :  { %1687 = vmatprep.subr.bf16.mxu1 %v1912_v0  ;;  %1759 = vmatprep.subr.bf16.mxu0 %v1912_v0  ;;  %v2173_v50 = vadd.f32 %v102_v39, %v88_v30  ;;  %v277_v30 = vand.u32 4294901760, %v2196_v38  ;;  %v1697_v6 = vpack.c.bf16 %v244_v51, %v237_v17  ;;  %v1769_v39 = vpack.c.bf16 %v242_v36, %v235_v35 }
  0x47   :  { %v285_v36 = vsub.f32 %v2201_v43, %v284_v59  ;;  %v1703_v12 = vpack.c.bf16 %v272_v33, %v265_v47  ;;  %v293_v8 = vand.u32 4294901760, %v292_v3  ;;  %v306_v17 = vsub.f32 %v2232_v40, %v305_v11 }
  0x48   :  { %v278_v35 = vsub.f32 %v2196_v38, %v277_v30  ;;  %v1721_v54 = vpack.c.bf16 %v2125_v14, %v2120_v13  ;;  %v1736_v55 = vpack.c.bf16 %v2237_v46, %v2232_v40 }
  0x49   :  { %1689 = vmatpush3.bf16.msra.mxu1 %v2169_v28  ;;  %1761 = vmatpush3.bf16.msra.mxu0 %v2169_v28  ;;  %v307_v51 = vand.u32 4294901760, %v306_v17  ;;  %v790_v17 = vld [vmem:[#allocation3] sm:$0xf] }
  0x4a   :  { %1690 = vmatprep.subr.bf16.mxu1 %v1912_v0  ;;  %1762 = vmatprep.subr.bf16.mxu0 %v1912_v0  ;;  %v279_v19 = vand.u32 4294901760, %v278_v35 }
  0x4c   :  { %1459 = vmatmul.mubr.f32.vlgmr.msra.gmra.mrb[0].mxu1 %v198_v63  ;;  %1564 = vmatmul.mubr.f32.vlgmr.msra.gmra.mrb[0].mxu0 %v196_v21  ;;  %v2217_v21 = vsub.f32 %v2082_v60, %v153_v7  ;;  %v251_v60 = vand.u32 4294901760, %v250_v27  ;;  %v258_v7 = vand.u32 4294901760, %v257_v45  ;;  %v286_v63 = vand.u32 4294901760, %v285_v36 }
  0x4d   :  { %1692 = vmatpush3.bf16.msra.mxu1 %v1691_v15  ;;  %1764 = vmatpush3.bf16.msra.mxu0 %v1763_v57  ;;  %v1772_v57 = vpack.c.bf16 %v256_v42, %v249_v37  ;;  %v312_v15 = vand.u32 4294901760, %v2237_v46  ;;  %v1778_v42 = vpack.c.bf16 %v284_v59, %v277_v30  ;;  %v1718_v30 = vpack.c.bf16 %v2090_v62, %v2087_v61 }
  0x4e   :  { %1693 = vmatprep.subr.bf16.mxu1 %v1912_v0  ;;  %1765 = vmatprep.subr.bf16.mxu0 %v1912_v0  ;;  %v1700_v49 = vpack.c.bf16 %v258_v7, %v251_v60  ;;  %v298_v4 = vand.u32 4294901760, %v2217_v21  ;;  %v1706_v37 = vpack.c.bf16 %v286_v63, %v279_v19 }
  0x4f   :  { %1493 = vmatprep.mubr.msk.f32.mxu1 %vm1914_vm0, %v1913_v1  ;;  %1598 = vmatprep.mubr.msk.f32.mxu0 %vm1914_vm0, %v1913_v1  ;;  %v313_v24 = vsub.f32 %v2237_v46, %v312_v15  ;;  %v1784_v22 = vpack.c.bf16 %v312_v15, %v305_v11 }
  0x50   :  { %v299_v10 = vsub.f32 %v2217_v21, %v298_v4 }
  0x51   :  { %1695 = vmatpush3.bf16.msra.mxu1 %v1694_v44  ;;  %1767 = vmatpush3.bf16.msra.mxu0 %v1766_v9  ;;  %v1781_v44 = vpack.c.bf16 %v298_v4, %v291_v58  ;;  %v314_v27 = vand.u32 4294901760, %v313_v24 }
  0x52   :  { %1696 = vmatprep.subr.bf16.mxu1 %v1912_v0  ;;  %1768 = vmatprep.subr.bf16.mxu0 %v1912_v0  ;;  %v300_v9 = vand.u32 4294901760, %v299_v10 }
  0x53   :  { %v1712_v45 = vpack.c.bf16 %v314_v27, %v307_v51 }
  0x54   :  { %v1709_v25 = vpack.c.bf16 %v300_v9, %v293_v8 }
  0x55   :  { %1698 = vmatpush3.bf16.msra.mxu1 %v1697_v6  ;;  %1770 = vmatpush3.bf16.msra.mxu0 %v1769_v39 }
  0x56   :  { %1699 = vmatprep.subr.bf16.mxu1 %v1912_v0  ;;  %1771 = vmatprep.subr.bf16.mxu0 %v1912_v0 }
  0x59   :  { %1701 = vmatpush3.bf16.msra.mxu1 %v1700_v49  ;;  %1773 = vmatpush3.bf16.msra.mxu0 %v1772_v57 }
  0x5a   :  { %1702 = vmatprep.subr.bf16.mxu1 %v1912_v0  ;;  %1774 = vmatprep.subr.bf16.mxu0 %v1912_v0 }
  0x5d   :  { %1704 = vmatpush3.bf16.msra.mxu1 %v1703_v12  ;;  %1776 = vmatpush3.bf16.msra.mxu0 %v1775_v16 }
  0x5e   :  { %1705 = vmatprep.subr.bf16.mxu1 %v1912_v0  ;;  %1777 = vmatprep.subr.bf16.mxu0 %v1912_v0 }
  0x61   :  { %1707 = vmatpush3.bf16.msra.mxu1 %v1706_v37  ;;  %1779 = vmatpush3.bf16.msra.mxu0 %v1778_v42 }
  0x62   :  { %1708 = vmatprep.subr.bf16.mxu1 %v1912_v0  ;;  %1780 = vmatprep.subr.bf16.mxu0 %v1912_v0 }
  0x65   :  { %1710 = vmatpush3.bf16.msra.mxu1 %v1709_v25  ;;  %1782 = vmatpush3.bf16.msra.mxu0 %v1781_v44 }
  0x66   :  { %1711 = vmatprep.subr.bf16.mxu1 %v1912_v0  ;;  %1783 = vmatprep.subr.bf16.mxu0 %v1912_v0 }
  0x69   :  { %1713 = vmatpush3.bf16.msra.mxu1 %v1712_v45  ;;  %1785 = vmatpush3.bf16.msra.mxu0 %v1784_v22 }
  0x6a   :  { %1714 = vmatprep.subr.bf16.mxu1 %v1912_v0  ;;  %1786 = vmatprep.subr.bf16.mxu0 %v1912_v0 }
  0x6c   :  { %1494 = vmatmul.mubr.f32.vlgmr.msra.gmra.mrb[0].mxu1 %v2060_v53  ;;  %1599 = vmatmul.mubr.f32.vlgmr.msra.gmra.mrb[0].mxu0 %v2060_v53 }
  0x6d   :  { %1716 = vmatpush3.bf16.msra.mxu1 %v1715_v26  ;;  %1788 = vmatpush3.bf16.msra.mxu0 %v1996_v20  ;;  %v1724_v20 = vpack.c.bf16 %v2161_v48, %v2151_v31 }
  0x6e   :  { %1717 = vmatprep.subr.bf16.mxu1 %v1912_v0  ;;  %1789 = vmatprep.subr.bf16.mxu0 %v1912_v0 }
  0x6f   :  { %1528 = vmatprep.mubr.msk.f32.mxu1 %vm1914_vm0, %v1913_v1  ;;  %1633 = vmatprep.mubr.msk.f32.mxu0 %vm1914_vm0, %v1913_v1 }
  0x71   :  { %1719 = vmatpush3.bf16.msra.mxu1 %v1718_v30  ;;  %1791 = vmatpush3.bf16.msra.mxu0 %v2004_v23  ;;  %v1727_v23 = vpack.c.bf16 %v2183_v34, %v2178_v29 }
  0x72   :  { %1720 = vmatprep.subr.bf16.mxu1 %v1912_v0  ;;  %1792 = vmatprep.subr.bf16.mxu0 %v1912_v0 }
  0x75   :  { %1722 = vmatpush3.bf16.msra.mxu1 %v1721_v54  ;;  %1794 = vmatpush3.bf16.msra.mxu0 %v2024_v32  ;;  %v1730_v32 = vpack.c.bf16 %v2201_v43, %v2196_v38  ;;  %v764_v43 = vlaneseq }
  0x76   :  { %1723 = vmatprep.subr.bf16.mxu1 %v1912_v0  ;;  %1795 = vmatprep.subr.bf16.mxu0 %v1912_v0 }
  0x77   :  { %v2317_v59 = vshrl.u32 %v764_v43, 7  ;;  %v2326_v60 = vand.u32 127, %v764_v43 }
  0x79   :  { %1725 = vmatpush3.bf16.msra.mxu1 %v1724_v20  ;;  %1797 = vmatpush3.bf16.msra.mxu0 %v2044_v41  ;;  %v1733_v41 = vpack.c.bf16 %v2217_v21, %v2212_v52  ;;  %v774_v39 = vadd.s32 1, %v2317_v59  ;;  %v772_v7 = vmul.u32 4, %v2317_v59  ;;  %vm778_vm6 = vcmp.lt.s32.totalorder %v2326_v60, 16 }
  0x7a   :  { %1726 = vmatprep.subr.bf16.mxu1 %v1912_v0  ;;  %1798 = vmatprep.subr.bf16.mxu0 %v1912_v0  ;;  %vm1273_vm10 = vcmp.le.s32.totalorder %v2326_v60, %v2317_v59  ;;  %vm1271_vm11 = vcmp.ge.s32.totalorder %v2326_v60, %v2317_v59 }
  0x7b   :  { %v775_v40 = vmul.u32 4, %v774_v39  ;;  %vm2332_vm3 = vcmp.ge.s32.totalorder %v2326_v60, %v772_v7 }
  0x7d   :  { %1728 = vmatpush3.bf16.msra.mxu1 %v1727_v23  ;;  %1800 = vmatpush3.bf16.msra.mxu0 %v2074_v56  ;;  %vm2337_vm4 = vcmp.lt.s32.totalorder %v2326_v60, %v775_v40 }
  0x7e   :  { %1729 = vmatprep.subr.bf16.mxu1 %v1912_v0  ;;  %1801 = vmatprep.subr.bf16.mxu0 %v1912_v0  ;;  %vm777_vm5 = vmand %vm2332_vm3, %vm2337_vm4 }
  0x7f   :  { %vm779_vm8 = vmxor %vm777_vm5, %vm1916_vm7 }
  0x80   :  { %vm780_vm9 = vmand %vm778_vm6, %vm779_vm8 }
  0x81   :  { %1731 = vmatpush3.bf16.msra.mxu1 %v1730_v32  ;;  %1803 = vmatpush3.bf16.msra.mxu0 %v2096_v2 }
  0x82   :  { %1732 = vmatprep.subr.bf16.mxu1 %v1912_v0  ;;  %1804 = vmatprep.subr.bf16.mxu0 %v1912_v0 }
  0x85   :  { %1734 = vmatpush3.bf16.msra.mxu1 %v1733_v41  ;;  %1806 = vmatpush3.bf16.msra.mxu0 %v2139_v18  ;;  %v815_v18 = vld [vmem:[#allocation4] sm:$0xf] }
  0x86   :  { %1735 = vmatprep.subr.bf16.mxu1 %v1912_v0  ;;  %1807 = vmatprep.subr.bf16.mxu0 %v1912_v0 }
  0x89   :  { %1737 = vmatpush3.bf16.msra.mxu1 %v1736_v55  ;;  %1809 = vmatpush3.bf16.msra.mxu0 %v2169_v28 }
  0x8a   :  { %1636 = vmatprep.subr.mxu0 %v1913_v1  ;;  %1651 = vmatprep.subr.mxu1 %v1913_v1 }
  0x8c   :  { %1529 = vmatmul.mubr.f32.vlgmr.msra.gmra.mrb[0].mxu1 %v2103_v5  ;;  %1634 = vmatmul.mubr.f32.vlgmr.msra.gmra.mrb[0].mxu0 %v2060_v53  ;;  %v104_v5 = vrot.slane %v2173_v50, 4 }
  0x8d   :  { %1653 = vmatprep.mubr.msk.f32.mxu1 %vm1914_vm0, %v1913_v1  ;;  %1638 = vmatprep.mubr.msk.f32.mxu0 %vm1914_vm0, %v1913_v1 }
  0x8e   :  { %v105_v53 = vadd.f32 %v104_v5, %v2173_v50 }
  0x90   :  { %v106_v13 = vrot.slane %v105_v53, 2 }
  0x92   :  { %v107_v14 = vadd.f32 %v106_v13, %v105_v53 }
  0x94   :  { %v108_v31 = vrot.slane %v107_v14, 1 }
  0x96   :  { %v109_v34 = vadd.f32 %v108_v31, %v107_v14 }
  0x98   :  { %v110_v21 = vmax.f32 %v109_v34, 1e-24 }
  0xb8   :  { %v51_v56 = vpop.xlane.xlu0 %50 }
  0xb9   :  { %v52_v61 = vmax.f32 %v51_v56, 1e-24 }
  0xbb   :  { %1844 = vrsqrt.f32 %v52_v61 }
  0xbc   :  { %1846 = vrsqrt.f32 %v110_v21 }
  0xc5   :  { %v1845_v0 = vpop.eup %1844 }
  0xc6   :  { %55 = vst.msk [vmem:[#allocation2] sm:$0xf] %vm54_vm2, %v1845_v0  ;;  %v1847_v12 = vpop.eup %1846 }
  0xcd   :  { %v816_v62 = vld [vmem:[#allocation2] sm:$0xf] }
  0xce   :  { %v754_v2 = vld [vmem:[#allocation2] sm:$0xf]  ;;  %819 = vperm.xlu0 %1842, %v816_v62   ;;  %v1274_v62 = vsel %vm1273_vm10, 1.0, %v1913_v1 }
  0xcf   :  { %757 = vperm.xlu1 %1843, %v754_v2  }
 0x14d   :  { %v820_v48 = vpop.permute.xlu0 %819 }
 0x14e   :  { %v822_v28 = vmul.f32 %v820_v48, %v815_v18  ;;  %v758_v49 = vpop.permute.xlu1 %757 }
 0x150   :  { %v824_v29 = vand.u32 4294901760, %v822_v28 }
 0x152   :  { %v890_v38 = vsub.f32 %v822_v28, %v824_v29  ;;  %1637 = vmatpush3.xpose.msra.mxu0 %v824_v29  ;;  %1652 = vmatpush3.xpose.msra.mxu1 %v824_v29 }
 0x153   :  { %1656 = vmatprep.subr.mxu1 %v1913_v1  ;;  %1641 = vmatprep.subr.mxu0 %v1913_v1 }
 0x154   :  { %v891_v52 = vand.u32 4294901760, %v890_v38 }
 0x156   :  { %1654 = vmatmul.mubr.f32.vlgmr.msra.gmra.mrb[2].mxu1 %v891_v52  ;;  %v892_v50 = vsub.f32 %v890_v38, %v891_v52 }
 0x157   :  { %1657 = vmatpush3.xpose.msra.mxu1 %v891_v52  ;;  %1658 = vmatprep.mubr.msk.f32.mxu1 %vm1914_vm0, %v1913_v1 }
 0x158   :  { %v893_v6 = vand.u32 4294901760, %v892_v50  ;;  %1661 = vmatprep.subr.mxu1 %v1913_v1 }
 0x15a   :  { %1639 = vmatmul.mubr.f32.vlgmr.msra.gmra.mrb[2].mxu0 %v893_v6 }
 0x15b   :  { %1642 = vmatpush3.xpose.msra.mxu0 %v893_v6  ;;  %1643 = vmatprep.mubr.msk.f32.mxu0 %vm1914_vm0, %v1913_v1 }
 0x15c   :  { %1646 = vmatprep.subr.mxu0 %v1913_v1 }
 0x15e   :  { %1659 = vmatmul.mubr.f32.vlgmr.msra.gmra.mrb[2].mxu1 %v824_v29 }
 0x15f   :  { %v455_v46 = vpop.f32.mrb[0].mxu1  ;;  %v750_v47 = vpop.f32.mrb[0].mxu0  ;;  %1662 = vmatpush3.xpose.msra.mxu1 %v824_v29  ;;  %1663 = vmatprep.mubr.msk.f32.mxu1 %vm1914_vm0, %v1913_v1 }
 0x160   :  { %v1810_v33 = vadd.f32 %v750_v47, %v455_v46  ;;  %v1530_v35 = vpop.f32.mrb[1].mxu1  ;;  %v1635_v36 = vpop.f32.mrb[1].mxu0 }
 0x162   :  { %v760_v57 = vmul.f32 %v1810_v33, %v758_v49  ;;  %1644 = vmatmul.mubr.f32.vlgmr.msra.gmra.mrb[2].mxu0 %v824_v29 }
 0x163   :  { %1647 = vmatpush3.xpose.msra.mxu0 %v890_v38  ;;  %1648 = vmatprep.mubr.msk.f32.mxu0 %vm1914_vm0, %v1913_v1 }
 0x164   :  { %v761_v16 = vmul.f32 2.0, %v760_v57 }
 0x166   :  { %v762_v19 = vmul.f32 %v1847_v12, %v761_v16  ;;  %1664 = vmatmul.mubr.f32.vlgmr.msra.gmra.mrb[2].mxu1 %v824_v29 }
 0x168   :  { %v763_v63 = vsub.f32 2.0, %v762_v19 }
 0x16a   :  { %v1311_v3 = vadd.f32 -0.25, %v763_v63  ;;  %v785_v10 = vsub.f32 0.4, %v763_v63  ;;  %1649 = vmatmul.mubr.f32.vlgmr.msra.gmra.mrb[2].mxu0 %v890_v38 }
 0x16c   :  { %v782_v11 = vmax.f32 %v1311_v3, 0.0  ;;  %v786_v15 = vmax.f32 %v785_v10, 0.0 }
 0x16e   :  { %v783_v37 = vsel %vm777_vm5, %v782_v11, 0.0  ;;  %v787_v42 = vsel %vm780_vm9, %v786_v15, 0.0 }
 0x16f   :  { %v784_v8 = vmul.f32 0.0625, %v783_v37  ;;  %v788_v9 = vmul.f32 0.020833334, %v787_v42 }
 0x171   :  { %v789_v24 = vadd.f32 %v788_v9, %v784_v8 }
 0x173   :  { %v791_v25 = vadd.f32 %v790_v17, %v789_v24 }
 0x175   :  { %792 = vst [vmem:[#allocation3] sm:$0xf] %v791_v25 }
 0x17c   :  { %v796_v44 = vld [vmem:[#allocation3] sm:$0xf] }
 0x17d   :  { %v798_v51 = vsel %vm48_vm1, %v796_v44, 0.0 }
 0x17e   :  { %799 = vadd.xlane.f32.xlu1 %v798_v51 }
 0x20b   :  { %v800_v27 = vpop.xlane.xlu1 %799 }
 0x20c   :  { %v801_v45 = vrot.slane %v800_v27, 4 }
 0x20e   :  { %v802_v22 = vadd.f32 %v801_v45, %v800_v27 }
 0x210   :  { %v803_v26 = vrot.slane %v802_v22, 2 }
 0x212   :  { %v804_v30 = vadd.f32 %v803_v26, %v802_v22 }
 0x214   :  { %v805_v54 = vrot.slane %v804_v30, 1 }
 0x216   :  { %v806_v20 = vadd.f32 %v805_v54, %v804_v30 }
 0x218   :  { %1828 = vpush %v806_v20 }
 0x239   :  { %v1265_v23 = vpop.f32.mrb[2].mxu1 }
 0x23a   :  { %v1665_v32 = vpop.f32.mrb[3].mxu1 }
 0x23d   :  { %v1045_v41 = vpop.f32.mrb[2].mxu0 }
 0x23e   :  { %v1811_v55 = vadd.f32 %v1265_v23, %v1045_v41  ;;  %v1650_v56 = vpop.f32.mrb[3].mxu0 }
 0x240   :  { %v1269_v61 = vmul.f32 2.0, %v1811_v55 }
 0x242   :  { %v1270_v0 = vsub.f32 2.0, %v1269_v61 }
 0x244   :  { %v1272_v2 = vsel %vm1271_vm11, %v1270_v0, 0.0 }
 0x245   :  { %v1275_v5 = vadd.f32 %v1274_v62, %v1272_v2 }
 0x247   :  { %v1277_v53 = vsub.f32 0.9, %v1275_v5 }
 0x249   :  { %v1278_v13 = vmax.f32 %v1277_v53, 0.0  ;;  %s1829_s1 = spop %1828 }
 0x24b   :  { %v1280_v14 = vsel %vm1279_vm12, %v1278_v13, 0.0 }
 0x24c   :  { %1281 = vadd.xlane.f32.xlu1 %v1280_v14 }
 0x2d9   :  { %v1282_v18 = vpop.xlane.xlu1 %1281 }
 0x2da   :  { %v1283_v31 = vrot.slane %v1282_v18, 4 }
 0x2dc   :  { %v1284_v48 = vadd.f32 %v1283_v31, %v1282_v18 }
 0x2de   :  { %v1285_v28 = vrot.slane %v1284_v48, 2 }
 0x2e0   :  { %v1286_v29 = vadd.f32 %v1285_v28, %v1284_v48 }
 0x2e2   :  { %v1287_v34 = vrot.slane %v1286_v29, 1 }
 0x2e4   :  { %v1288_v38 = vadd.f32 %v1287_v34, %v1286_v29 }
 0x2e6   :  { %1830 = vpush %v1288_v38 }
 0x317   :  { %s1831_s6 = spop %1830 }
 0x318   :  { %s1292_s7 = smul.f32 0.1, %s1831_s6 }
 0x31a   :  { %s1293_s8 = sadd.f32 %s1829_s1, %s1292_s7 }
 0x31c   :  { %1295 = sst [smem:[#allocation9]] %s1293_s8 }
 0x31d   :  { %1901 = shalt.err (!%p1898_p4)
}
 0x31e   :  { %s1917_s16 = smov [#allocation9]  }
 0x31f   :  { %1303 = dma.smem_to_hbm %s1917_s16, 16, %s2368_s2, [#allocation6]  }
 0x320   :  { %1906 = dma.done.wait [#allocation6], 16  }
 0x321   :  { %1907 = vsyncadd [#allocation6], 4294967280 }
 0x322   :  { %1307 = sfence }
 0x323   :  { %1308 = vsyncpa [#allocation5], 1 }
 0x324   :  { %1309 = vsyncpa [#allocation8], 1 }
 0x325   :  { %1310 = vsyncpa [#allocation6], 1 }

</bundles_post_ra>
